<compile_context>
chip_gen: v5e
topology: v5e:2x2
jax: 0.10.0
libtpu: 0.0.40
codegen_flags: <defaults>
</compile_context>

<pallas_src>
import jax
import jax.numpy as jnp
from jax.experimental import pallas as pl
from jax.experimental.pallas import tpu as pltpu


def _distlinear_kernel(x_ref, vt_ref, ws_ref, o_ref, ssq_ref):
    k = pl.program_id(2)

    @pl.when(k == 0)
    def _():
        o_ref[...] = jnp.zeros_like(o_ref)
        ssq_ref[...] = jnp.zeros_like(ssq_ref)

    x = x_ref[...]                                   # (tm, tk) bf16
    xf = x.astype(jnp.float32)

    # Partial sum-of-squares for the x row norms, accumulated in f32 over K tiles.
    ssq_ref[...] += jnp.sum(xf * xf, axis=1, keepdims=True)        # (tm, 1)

    # Native NN MXU matmul: bf16 x bf16 -> f32, accumulated in the resident
    # output block (same (i, j) block index for every k -> stays in VMEM).
    o_ref[...] += jnp.dot(x, vt_ref[...],
                          preferred_element_type=jnp.float32)      # (tm, tn)

    @pl.when(k == pl.num_programs(2) - 1)
    def _():
        # PyTorch adds 1e-5 to the L2 norm itself: scale = 1/(sqrt(ssq) + 1e-5).
        row_scale = 1.0 / (jnp.sqrt(ssq_ref[...]) + 1e-5)          # (tm, 1)
        # ws already holds 10 * g / ||v||  (folded in the wrapper).
        o_ref[...] = o_ref[...] * row_scale * ws_ref[...]


def _round_up(x, m):
    return ((x + m - 1) // m) * m


def _choose_tiles(B, outdim, indim, tm_cap=512, tn_cap=1024, tk_cap=1024):
    # bf16 packs 16 rows per sublane group -> align the batch tile to 16.
    tm = min(tm_cap, _round_up(B, 16))
    tn = min(tn_cap, _round_up(outdim, 128))
    tk = min(tk_cap, _round_up(indim, 128))
    # v7x has 2 TensorCores: if both parallel axes would be single-block, split N
    # so megacore sharding has something to distribute.
    m_blocks = _round_up(B, tm) // tm
    n_blocks = _round_up(outdim, tn) // tn
    if m_blocks == 1 and n_blocks == 1 and tn >= 256:
        tn = _round_up((tn + 1) // 2, 128)
    return tm, tn, tk


def prepare_dist_linear_weights(v, g, tn, tk):
    """One-time (cacheable) weight prep: norm, 10x fold, transpose, pad, bf16 cast.

    v: (outdim, indim) f32, g: (outdim, 1) f32.
    Returns (vt_p: (Kp, Np) bf16, ws_p: (1, Np) f32).
    """
    outdim, indim = v.shape
    Np = _round_up(outdim, tn)
    Kp = _round_up(indim, tk)

    # Column scale from full-precision weights; fold the scale_factor=10 here.
    w_scale = (10.0 * g.reshape(outdim)
               / jnp.linalg.norm(v, axis=1)).reshape(1, outdim).astype(jnp.float32)
    ws_p = w_scale if Np == outdim else jnp.pad(w_scale, ((0, 0), (0, Np - outdim)))

    # Pre-transpose once to (indim, outdim): the kernel then runs a plain NN matmul
    # (no per-tile XLU transpose of the weight tile).
    vt = v.T
    if (Kp, Np) != (indim, outdim):
        vt = jnp.pad(vt, ((0, Kp - indim), (0, Np - outdim)))
    return vt.astype(jnp.bfloat16), ws_p


def _dist_linear_apply(x, vt_p, ws_p, outdim, tm, tn, tk):
    B, indim = x.shape
    Kp, Np = vt_p.shape
    Bp = _round_up(B, tm)

    # Zero padding is exact: padded K contributes 0 to both the matmul and the
    # sum-of-squares; padded N columns are zeroed via ws_p; padded M rows finalize
    # to 0 (row_scale = 1e5 is finite) and are sliced off below.
    x_p = x
    if (Bp, Kp) != (B, indim):
        x_p = jnp.pad(x, ((0, Bp - B), (0, Kp - indim)))
    x_p = x_p.astype(jnp.bfloat16)

    grid = (Bp // tm, Np // tn, Kp // tk)

    out = pl.pallas_call(
        _distlinear_kernel,
        out_shape=jax.ShapeDtypeStruct((Bp, Np), jnp.float32),
        grid_spec=pltpu.PrefetchScalarGridSpec(
            num_scalar_prefetch=0,
            grid=grid,
            in_specs=[
                pl.BlockSpec((tm, tk), lambda i, j, k: (i, k)),   # x tile (bf16)
                pl.BlockSpec((tk, tn), lambda i, j, k: (k, j)),   # v.T tile (bf16)
                pl.BlockSpec((1, tn), lambda i, j, k: (0, j)),    # 10*g/||v|| (f32)
            ],
            out_specs=pl.BlockSpec((tm, tn), lambda i, j, k: (i, j)),
            scratch_shapes=[
                pltpu.VMEM((tm, 1), jnp.float32),                 # x sum-of-squares
            ],
        ),
        compiler_params=pltpu.CompilerParams(
            dimension_semantics=("parallel", "parallel", "arbitrary"),
            vmem_limit_bytes=48 * 1024 * 1024),
    )(x_p, vt_p, ws_p)

    return out[:B, :outdim]


def dist_linear(x, v, g, *, tm_cap=512, tn_cap=1024, tk_cap=1024):
    """x: (B, indim) f32, v: (outdim, indim) f32, g: (outdim, 1) f32 -> (B, outdim) f32.

    For static weights (inference), call prepare_dist_linear_weights() once and
    reuse its outputs with _dist_linear_apply() to skip the per-call weight pass.
    """
    B, indim = x.shape
    outdim = v.shape[0]
    tm, tn, tk = _choose_tiles(B, outdim, indim, tm_cap, tn_cap, tk_cap)
    vt_p, ws_p = prepare_dist_linear_weights(v, g, tn, tk)
    return _dist_linear_apply(x, vt_p, ws_p, outdim, tm, tn, tk)


def dist_linear_ref(x, v, g):
    x_norm = jnp.linalg.norm(x, axis=1, keepdims=True)
    x_n = x / (x_norm + 1e-5)
    v_norm = jnp.linalg.norm(v, axis=1, keepdims=True)
    w_eff = (g / v_norm) * v
    return 10.0 * (x_n @ w_eff.T)


if __name__ == "__main__":
    key = jax.random.PRNGKey(0)
    B, indim, outdim = 8, 32, 16

    kx, kv = jax.random.split(key)
    x = jax.random.normal(kx, (B, indim), dtype=jnp.float32)

    # nn.Linear-style deterministic init for v; WeightNorm.apply initializes
    # g to the per-row norm of the initial weight.
    bound = 1.0 / (indim ** 0.5)
    v = jax.random.uniform(kv, (outdim, indim), dtype=jnp.float32,
                           minval=-bound, maxval=bound)
    g = jnp.linalg.norm(v, axis=1, keepdims=True)  # (outdim, 1)

    out = dist_linear(x, v, g)
    out = jax.block_until_ready(out)

    ref = dist_linear_ref(x, v, g)
    assert out.shape == (B, outdim)
    # Tolerance relaxed vs the pure-f32 version: operands are cast to bf16 for the
    # MXU (outputs are bounded by |10| so absolute error stays well under 5e-2).
    assert jnp.allclose(out, ref, atol=5e-2, rtol=5e-2), "mismatch vs reference"

    print("KERNEL_OK")
</pallas_src>

<mosaic_0001>
module attributes {stable_mosaic.version = 11 : i64} {
  func.func @_distlinear_kernel(%arg0: i32, %arg1: i32, %arg2: i32, %arg3: memref<16x128xbf16, #tpu.memory_space<vmem>>, %arg4: memref<128x128xbf16, #tpu.memory_space<vmem>>, %arg5: memref<1x128xf32, #tpu.memory_space<vmem>>, %arg6: memref<16x128xf32, #tpu.memory_space<vmem>>, %arg7: memref<16x1xf32, #tpu.memory_space<vmem>>) attributes {dimension_semantics = [#tpu.dimension_semantics<parallel>, #tpu.dimension_semantics<parallel>, #tpu.dimension_semantics<arbitrary>], iteration_bounds = array<i64: 1, 1, 1>, scalar_prefetch = 0 : i64, scratch_operands = 1 : i64, tpu.core_type = #tpu.core_type<tc>, window_params = [{transform_indices = @transform_0, window_bounds = array<i64: 16, 128>}, {transform_indices = @transform_1, window_bounds = array<i64: 128, 128>}, {transform_indices = @transform_2, window_bounds = array<i64: 1, 128>}, {transform_indices = @transform_3, window_bounds = array<i64: 16, 128>}]} {
    %c0_i32 = arith.constant 0 : i32
    %0 = arith.cmpi eq, %arg2, %c0_i32 : i32
    %1 = arith.extui %0 : i1 to i32
    %c0_i32_0 = arith.constant 0 : i32
    %2 = arith.cmpi ne, %1, %c0_i32_0 : i32
    scf.if %2 {
      %cst_15 = arith.constant 0.000000e+00 : f32
      %19 = vector.broadcast %cst_15 : f32 to vector<16x128xf32>
      %c0_16 = arith.constant 0 : index
      %c0_17 = arith.constant 0 : index
      %20 = vector.load %arg6[%c0_16, %c0_17] : memref<16x128xf32, #tpu.memory_space<vmem>>, vector<16x128xf32>
      tpu.vector_store %arg6[%c0_16, %c0_17], %19 {strides = array<i32>} : memref<16x128xf32, #tpu.memory_space<vmem>>, vector<16x128xf32>,
      %cst_18 = arith.constant 0.000000e+00 : f32
      %21 = vector.broadcast %cst_18 : f32 to vector<16x1xf32>
      %c0_19 = arith.constant 0 : index
      %c0_20 = arith.constant 0 : index
      %22 = vector.load %arg7[%c0_19, %c0_20] : memref<16x1xf32, #tpu.memory_space<vmem>>, vector<16x1xf32>
      tpu.vector_store %arg7[%c0_19, %c0_20], %21 {strides = array<i32>} : memref<16x1xf32, #tpu.memory_space<vmem>>, vector<16x1xf32>,
    } else {
    }
    %c0 = arith.constant 0 : index
    %c0_1 = arith.constant 0 : index
    %3 = vector.load %arg3[%c0, %c0_1] : memref<16x128xbf16, #tpu.memory_space<vmem>>, vector<16x128xbf16>
    %4 = arith.extf %3 : vector<16x128xbf16> to vector<16x128xf32>
    %c0_2 = arith.constant 0 : index
    %c0_3 = arith.constant 0 : index
    %5 = vector.load %arg7[%c0_2, %c0_3] : memref<16x1xf32, #tpu.memory_space<vmem>>, vector<16x1xf32>
    %6 = arith.mulf %4, %4 : vector<16x128xf32>
    %cst = arith.constant dense<0.000000e+00> : vector<16xf32>
    %7 = vector.multi_reduction <add>, %6, %cst [1] : vector<16x128xf32> to vector<16xf32>
    %8 = vector.shape_cast %7 : vector<16xf32> to vector<16x1xf32>
    %9 = arith.addf %5, %8 : vector<16x1xf32>
    %c0_4 = arith.constant 0 : index
    %c0_5 = arith.constant 0 : index
    %10 = vector.load %arg7[%c0_4, %c0_5] : memref<16x1xf32, #tpu.memory_space<vmem>>, vector<16x1xf32>
    tpu.vector_store %arg7[%c0_4, %c0_5], %9 {strides = array<i32>} : memref<16x1xf32, #tpu.memory_space<vmem>>, vector<16x1xf32>,
    %c0_6 = arith.constant 0 : index
    %c0_7 = arith.constant 0 : index
    %11 = vector.load %arg6[%c0_6, %c0_7] : memref<16x128xf32, #tpu.memory_space<vmem>>, vector<16x128xf32>
    %c0_8 = arith.constant 0 : index
    %c0_9 = arith.constant 0 : index
    %12 = vector.load %arg4[%c0_8, %c0_9] : memref<128x128xbf16, #tpu.memory_space<vmem>>, vector<128x128xbf16>
    %cst_10 = arith.constant dense<0.000000e+00> : vector<16x128xf32>
    %13 = tpu.matmul %3, %12, %cst_10 {dimension_numbers = #tpu.dot_dimension_numbers<[1], [0], [0], [1], [0, 0, 1, 1], [], []>} : vector<16x128xbf16>, vector<128x128xbf16>, vector<16x128xf32> -> vector<16x128xf32>
    %14 = arith.addf %11, %13 : vector<16x128xf32>
    %c0_11 = arith.constant 0 : index
    %c0_12 = arith.constant 0 : index
    %15 = vector.load %arg6[%c0_11, %c0_12] : memref<16x128xf32, #tpu.memory_space<vmem>>, vector<16x128xf32>
    tpu.vector_store %arg6[%c0_11, %c0_12], %14 {strides = array<i32>} : memref<16x128xf32, #tpu.memory_space<vmem>>, vector<16x128xf32>,
    %c0_i32_13 = arith.constant 0 : i32
    %16 = arith.cmpi eq, %arg2, %c0_i32_13 : i32
    %17 = arith.extui %16 : i1 to i32
    %c0_i32_14 = arith.constant 0 : i32
    %18 = arith.cmpi ne, %17, %c0_i32_14 : i32
    scf.if %18 {
      %c0_15 = arith.constant 0 : index
      %c0_16 = arith.constant 0 : index
      %19 = vector.load %arg7[%c0_15, %c0_16] : memref<16x1xf32, #tpu.memory_space<vmem>>, vector<16x1xf32>
      %20 = math.sqrt %19 : vector<16x1xf32>
      %cst_17 = arith.constant 9.99999974E-6 : f32
      %21 = vector.broadcast %cst_17 : f32 to vector<16x1xf32>
      %22 = arith.addf %20, %21 : vector<16x1xf32>
      %cst_18 = arith.constant 1.000000e+00 : f32
      %23 = vector.broadcast %cst_18 : f32 to vector<16x1xf32>
      %24 = arith.divf %23, %22 : vector<16x1xf32>
      %c0_19 = arith.constant 0 : index
      %c0_20 = arith.constant 0 : index
      %25 = vector.load %arg6[%c0_19, %c0_20] : memref<16x128xf32, #tpu.memory_space<vmem>>, vector<16x128xf32>
      %26 = vector.broadcast %24 : vector<16x1xf32> to vector<16x128xf32>
      %27 = arith.mulf %25, %26 : vector<16x128xf32>
      %c0_21 = arith.constant 0 : index
      %c0_22 = arith.constant 0 : index
      %28 = vector.load %arg5[%c0_21, %c0_22] : memref<1x128xf32, #tpu.memory_space<vmem>>, vector<1x128xf32>
      %29 = vector.broadcast %28 : vector<1x128xf32> to vector<16x128xf32>
      %30 = arith.mulf %27, %29 : vector<16x128xf32>
      %c0_23 = arith.constant 0 : index
      %c0_24 = arith.constant 0 : index
      %31 = vector.load %arg6[%c0_23, %c0_24] : memref<16x128xf32, #tpu.memory_space<vmem>>, vector<16x128xf32>
      tpu.vector_store %arg6[%c0_23, %c0_24], %30 {strides = array<i32>} : memref<16x128xf32, #tpu.memory_space<vmem>>, vector<16x128xf32>,
    } else {
    }
    return
  }
  func.func @transform_0(%arg0: i32, %arg1: i32, %arg2: i32) -> (i32, i32) {
    %c0_i32 = arith.constant 0 : i32
    return %arg0, %arg2 : i32, i32
  }
  func.func @transform_1(%arg0: i32, %arg1: i32, %arg2: i32) -> (i32, i32) {
    %c0_i32 = arith.constant 0 : i32
    return %arg2, %arg1 : i32, i32
  }
  func.func @transform_2(%arg0: i32, %arg1: i32, %arg2: i32) -> (i32, i32) {
    %c0_i32 = arith.constant 0 : i32
    %c0_i32_0 = arith.constant 0 : i32
    return %c0_i32, %arg1 : i32, i32
  }
  func.func @transform_3(%arg0: i32, %arg1: i32, %arg2: i32) -> (i32, i32) {
    %c0_i32 = arith.constant 0 : i32
    return %arg0, %arg1 : i32, i32
  }
}

</mosaic_0001>

<bundles_post_ra>
// kernel: tpu_custom_call.1
= control target key start
LH: loop header
LB: loop body
LE: loop exit
PB: predicated region body
PF: predicated region fallthrough
CT: control target
= control target key end

     0   :  { %8 = vsyncpa [#allocation4], 0  ;;  %s454_s0 = inlined_call_operand.hbm [shape: bf16[16,128], index: 0, kind: input, shape index: {}]   ;;  %s455_s1 = inlined_call_operand.hbm [shape: bf16[128,128], index: 1, kind: input, shape index: {}]   ;;  %s456_s2 = inlined_call_operand.vmem [shape: f32[1,128], index: 2, kind: input, shape index: {}]   ;;  %s457_s3 = inlined_call_operand.hbm [shape: f32[16,128], index: 3, kind: output, shape index: {}]  }
   0x1   :  { %9 = vsyncpa [#allocation7], 0 }
   0x2   :  { %10 = vsyncpa [#allocation5], 0  ;;  %s15_s14 = sshll.u32 %s454_s0, 4  ;;  %s409_s15 = smov [#allocation3]   ;;  %s16_s14 = int_to_ptr.hbm [resolvable:$true] %s15_s14 }
   0x3   :  { %s17_s16 = sshll.u32 %s409_s15, 4  ;;  %s28_s19 = sshll.u32 %s455_s1, 4  ;;  %s18_s16 = int_to_ptr.vmem [resolvable:$true] %s17_s16  ;;  %s29_s19 = int_to_ptr.hbm [resolvable:$true] %s28_s19 }
   0x4   :  { %s410_s20 = smov 64   ;;  %s411_s21 = smov 4  }
   0x5   :  { %23 = dma.hbm_to_vmem [thread:$0]  %s16_s14, 128, %s18_s16, [#allocation4], %s410_s20, %s410_s20, %s411_s21  }
   0x6   :  { %s412_s22 = smov [#allocation6]  }
   0x7   :  { %s30_s23 = sshll.u32 %s412_s22, 4  ;;  %s31_s23 = int_to_ptr.vmem [resolvable:$true] %s30_s23 }
   0x8   :  { %36 = dma.hbm_to_vmem [thread:$0]  %s29_s19, 1024, %s31_s23, [#allocation7], %s410_s20, %s410_s20, %s411_s21  }
   0x9   :  { %403 = dma.done.wait [#allocation4], 128  }
   0xa   :  { %404 = vsyncadd [#allocation4], 4294967168 }
   0xb   :  { %405 = dma.done.wait [#allocation7], 1024  }
   0xc   :  { %406 = vsyncadd [#allocation7], 4294966272  ;;  %vm53_vm0 = vcmask 7168   ;;  %v413_v0 = vmov 0.0   ;;  %v56_v1 = vld [vmem:[#allocation3] sm:$0xff]   ;;  %v309_v4 = vld [vmem:[#allocation6 + $0x30] sm:$0xff] }
   0xd   :  { %54 = vst.msk [vmem:[#allocation2] sm:$0xff] %vm53_vm0, %v413_v0  ;;  %v310_v2 = vld [vmem:[#allocation6 + $0x38] sm:$0xff]  ;;  %v58_v3 = vunpack.c.l.bf16 %v56_v1  ;;  %v59_v6 = vunpack.c.h.bf16 %v56_v1  ;;  %v308_v7 = vld [vmem:[#allocation6 + $0x28] sm:$0xff]  ;;  %v307_v9 = vld [vmem:[#allocation6 + $0x20] sm:$0xff]  ;;  %v414_v12 = vmov 0   ;;  %s415_s24 = smov [#allocation8]  }
   0xe   :  { %55 = vst.msk [vmem:[#allocation2 + $0x8] sm:$0xff] %vm53_vm0, %v413_v0  ;;  %145 = vmatpush.bf16.msra.mxu0 %v310_v2  ;;  %v306_v10 = vld [vmem:[#allocation6 + $0x18] sm:$0xff]  ;;  %v305_v11 = vld [vmem:[#allocation6 + $0x10] sm:$0xff]  ;;  %320 = vset.pattern.permute.xlu1 %v414_v12  ;;  %v304_v13 = vld [vmem:[#allocation6 + $0x8] sm:$0xff]  ;;  %s250_s25 = sshll.u32 %s415_s24, 4  ;;  %s252_s28 = sshll.u32 %s457_s3, 4  ;;  %s251_s25 = int_to_ptr.vmem [resolvable:$true] %s250_s25  ;;  %s253_s28 = int_to_ptr.hbm [resolvable:$true] %s252_s28 }
   0xf   :  { %v62_v5 = vmul.f32 %v58_v3, %v58_v3  ;;  %v63_v8 = vmul.f32 %v59_v6, %v59_v6  ;;  %321 = vset.pattern.permute.xlu0 %v414_v12  ;;  %v303_v14 = vld [vmem:[#allocation6] sm:$0xff]  ;;  %v302_v15 = vld [vmem:[#allocation3] sm:$0xff]  ;;  %v322_v3 = vld [vmem:[%s456_s2] ss:$0 sm:$0xff]  ;;  %s416_s29 = smov 128   ;;  %s417_s30 = smov 8  }
  0x11   :  { %64 = vadd.xlane.f32.xlu0 %v62_v5 }
  0x12   :  { %146 = vmatpush.bf16.msra.mxu0 %v309_v4 }
  0x14   :  { %v60_v16 = vld [vmem:[#allocation2] sm:$0xff] }
  0x15   :  { %v61_v19 = vld [vmem:[#allocation2 + $0x8] sm:$0xff] }
  0x16   :  { %147 = vmatpush.bf16.msra.mxu0 %v308_v7 }
  0x19   :  { %66 = vadd.xlane.f32.xlu0 %v63_v8 }
  0x1a   :  { %148 = vmatpush.bf16.msra.mxu0 %v307_v9 }
  0x1e   :  { %149 = vmatpush.bf16.msra.mxu0 %v306_v10 }
  0x22   :  { %150 = vmatpush.bf16.msra.mxu0 %v305_v11 }
  0x26   :  { %151 = vmatpush.bf16.msra.mxu0 %v304_v13 }
  0x2a   :  { %152 = vmatpush.bf16.msra.mxu0 %v303_v14 }
  0x2d   :  { %153 = vmatmul.bf16.vlgmr.msra.gmra.mxu0 %v302_v15 }
  0x84   :  { %v65_v17 = vpop.xlane.xlu0 %64 }
  0x85   :  { %v68_v18 = vadd.f32 %v65_v17, %v60_v16 }
  0x87   :  { %71 = vst.msk [vmem:[#allocation2] sm:$0xff] %vm53_vm0, %v68_v18 }
  0x8c   :  { %v67_v20 = vpop.xlane.xlu0 %66 }
  0x8d   :  { %v69_v21 = vadd.f32 %v67_v20, %v61_v19 }
  0x8e   :  { %v166_v22 = vld [vmem:[#allocation2] sm:$0xff] }
  0x8f   :  { %72 = vst.msk [vmem:[#allocation2 + $0x8] sm:$0xff] %vm53_vm0, %v69_v21  ;;  %323 = vrsqrt.f32 %v166_v22  ;;  %vm175_vm1 = vcmp.eq.f32.partialorder %v166_v22, inf  ;;  %v178_v34 = vand.u32 2147483648, %v166_v22  ;;  %vm177_vm2 = vcmp.eq.f32.partialorder %v166_v22, 0.0 }
  0x95   :  { %v324_v23 = vpop.eup %323 }
  0x96   :  { %v169_v24 = vmul.f32 %v324_v23, %v166_v22  ;;  %v167_v25 = vld [vmem:[#allocation2 + $0x8] sm:$0xff] }
  0x97   :  { %325 = vrsqrt.f32 %v167_v25  ;;  %vm187_vm3 = vcmp.eq.f32.partialorder %v167_v25, inf  ;;  %v190_v42 = vand.u32 2147483648, %v167_v25  ;;  %vm189_vm4 = vcmp.eq.f32.partialorder %v167_v25, 0.0 }
  0x98   :  { %v170_v26 = vmul.f32 %v324_v23, %v169_v24 }
  0x9a   :  { %v171_v27 = vmul.f32 0.5, %v170_v26 }
  0x9c   :  { %v172_v28 = vsub.f32 1.5, %v171_v27 }
  0x9d   :  { %v326_v29 = vpop.eup %325 }
  0x9e   :  { %v173_v30 = vmul.f32 %v324_v23, %v172_v28  ;;  %v181_v31 = vmul.f32 %v326_v29, %v167_v25 }
  0xa0   :  { %v174_v32 = vmul.f32 %v173_v30, %v166_v22  ;;  %v182_v33 = vmul.f32 %v326_v29, %v181_v31 }
  0xa2   :  { %v176_v35 = vsel %vm175_vm1, %v166_v22, %v174_v32  ;;  %v183_v36 = vmul.f32 0.5, %v182_v33 }
  0xa3   :  { %v179_v37 = vsel %vm177_vm2, %v178_v34, %v176_v35 }
  0xa4   :  { %v192_v38 = vadd.f32 1e-05, %v179_v37  ;;  %v184_v39 = vsub.f32 1.5, %v183_v36 }
  0xa6   :  { %327 = vrcp.f32 %v192_v38  ;;  %v185_v40 = vmul.f32 %v326_v29, %v184_v39  ;;  %v205_v49 = vand.u32 2147483648, %v192_v38  ;;  %v203_v51 = vand.u32 2147483647, %v192_v38 }
  0xa7   :  { %vm199_vm6 = vweird.f32 %v192_v38 }
  0xa8   :  { %v186_v41 = vmul.f32 %v185_v40, %v167_v25  ;;  %v206_v53 = vor.u32 1.1754944e-38, %v205_v49  ;;  %vm204_vm8 = vcmp.eq.f32.partialorder %v203_v51, 8.507059e+37 }
  0xaa   :  { %v188_v43 = vsel %vm187_vm3, %v167_v25, %v186_v41  ;;  %v154_v2 = vpop.f32.mrf.mxu0 }
  0xab   :  { %v191_v45 = vsel %vm189_vm4, %v190_v42, %v188_v43 }
  0xac   :  { %v328_v44 = vpop.eup %327  ;;  %v193_v47 = vadd.f32 1e-05, %v191_v45 }
  0xad   :  { %v195_v46 = vmul.f32 %v328_v44, %v192_v38  ;;  %vm200_vm5 = vweird.f32 %v328_v44 }
  0xae   :  { %329 = vrcp.f32 %v193_v47  ;;  %vm201_vm7 = vmor %vm199_vm6, %vm200_vm5  ;;  %v220_v59 = vand.u32 2147483648, %v193_v47  ;;  %v218_v61 = vand.u32 2147483647, %v193_v47  ;;  %vm214_vm10 = vweird.f32 %v193_v47 }
  0xaf   :  { %v196_v48 = vsub.f32 1.0, %v195_v46 }
  0xb0   :  { %v221_v63 = vor.u32 1.1754944e-38, %v220_v59  ;;  %vm219_vm12 = vcmp.eq.f32.partialorder %v218_v61, 8.507059e+37 }
  0xb1   :  { %v197_v50 = vmul.f32 %v328_v44, %v196_v48 }
  0xb2   :  { %v156_v7 = vpop.f32.mrf.mxu0 }
  0xb3   :  { %v198_v52 = vadd.f32 %v328_v44, %v197_v50 }
  0xb4   :  { %v330_v54 = vpop.eup %329 }
  0xb5   :  { %v202_v55 = vsel %vm201_vm7, %v328_v44, %v198_v52  ;;  %v210_v57 = vmul.f32 %v330_v54, %v193_v47  ;;  %vm215_vm9 = vweird.f32 %v330_v54 }
  0xb6   :  { %v207_v56 = vsel %vm204_vm8, %v206_v53, %v202_v55  ;;  %vm216_vm11 = vmor %vm214_vm10, %vm215_vm9 }
  0xb7   :  { %228 = vperm.xlu1 %320, %v207_v56   ;;  %v211_v58 = vsub.f32 1.0, %v210_v57 }
  0xb9   :  { %v212_v60 = vmul.f32 %v330_v54, %v211_v58 }
  0xbb   :  { %v213_v62 = vadd.f32 %v330_v54, %v212_v60 }
  0xbd   :  { %v217_v0 = vsel %vm216_vm11, %v330_v54, %v213_v62 }
  0xbe   :  { %v222_v1 = vsel %vm219_vm12, %v221_v63, %v217_v0 }
  0xbf   :  { %233 = vperm.xlu1 %320, %v222_v1  }
 0x129   :  { %v229_v4 = vpop.permute.xlu1 %228 }
 0x12a   :  { %v236_v5 = vmul.f32 %v229_v4, %v154_v2 }
 0x12c   :  { %v242_v6 = vmul.f32 %v322_v3, %v236_v5 }
 0x12e   :  { %244 = vst [vmem:[#allocation8] sm:$0xff] %v242_v6 }
 0x131   :  { %v234_v8 = vpop.permute.xlu1 %233 }
 0x132   :  { %v237_v9 = vmul.f32 %v234_v8, %v156_v7 }
 0x134   :  { %v243_v10 = vmul.f32 %v322_v3, %v237_v9 }
 0x136   :  { %245 = vst [vmem:[#allocation8 + $0x8] sm:$0xff] %v243_v10 }
 0x137   :  { %258 = dma.vmem_to_hbm [thread:$0]  %s251_s25, 256, %s253_s28, [#allocation5], %s416_s29, %s416_s29, %s417_s30  }
 0x138   :  { %407 = dma.done.wait [#allocation5], 256  }
 0x139   :  { %408 = vsyncadd [#allocation5], 4294967040 }
 0x13a   :  { %263 = vsyncpa [#allocation4], 1 }
 0x13b   :  { %264 = vsyncpa [#allocation7], 1 }
 0x13c   :  { %265 = vsyncpa [#allocation5], 1 }

</bundles_post_ra>
